<compile_context>
chip_gen: v5e
topology: v5e:2x2
jax: 0.10.0
libtpu: 0.0.40
codegen_flags: <defaults>
</compile_context>

<pallas_src>
import functools

import jax
import jax.numpy as jnp
from jax.experimental import pallas as pl
from jax.experimental.pallas import tpu as pltpu

_LANE = 128
_SUBLANE = 32                    # multiple of 32 satisfies f32(8)/bf16(16)/int8(32) sublane tiles
_VMEM_BUDGET = 40 * 1024 * 1024  # conservative block budget (v7x has only 64 MiB physical VMEM)


def _round_up(x: int, m: int) -> int:
    return (x + m - 1) // m * m


def _plan(B: int, V: int, H: int) -> dict:
    """Choose tile sizes and the kernel path from the problem shape."""
    tn = min(256, _round_up(H, _LANE))
    tm = min(256, _round_up(B, _SUBLANE))
    vp128 = _round_up(V, _LANE)
    # Resident-W path: whole padded V axis in one block; double-buffered footprint:
    resident_bytes = (2 * tm * vp128 * 2       # X blocks (bf16)
                      + 2 * vp128 * tn * 2     # W blocks (bf16)
                      + 2 * tm * tn * 4        # prob out blocks (f32)
                      + 2 * tm * tn * 1        # sample out blocks (int8)
                      + 2 * tn * 4)            # bias blocks
    if resident_bytes <= _VMEM_BUDGET:
        return dict(tm=tm, tn=tn, tk=vp128, Vp=vp128, resident=True,
                    vmem_bytes=resident_bytes)
    # Fallback: tiled reduction over V with a large TK.
    tk = min(1024, vp128)
    vp = _round_up(V, tk)
    tiled_bytes = (2 * tm * tk * 2 + 2 * tk * tn * 2 + 2 * tm * tn * 4
                   + 2 * tm * tn + 2 * tn * 4 + tm * tn * 4)
    return dict(tm=tm, tn=tn, tk=tk, Vp=vp, resident=False, vmem_bytes=tiled_bytes)


def prepare_rbm_params(W, h_bias, plan):
    """Pad + cast parameters ONCE (outside the per-step path of a training loop)."""
    V, H = W.shape
    Vp = plan["Vp"]
    Hp = _round_up(H, plan["tn"])
    Wp = jnp.zeros((Vp, Hp), jnp.bfloat16).at[:V, :H].set(W.astype(jnp.bfloat16))
    hbp = jnp.zeros((1, Hp), jnp.float32).at[0, :H].set(
        jnp.asarray(h_bias, jnp.float32).reshape(-1))
    return Wp, hbp


def _bernoulli_sample(prob, seed_i32, row_off, col_off):
    """u(global_row, global_col, seed) < prob with a stateless murmur-style counter hash.

    Deterministic, grid-invariant, works under interpret mode.  Uniforms have 24-bit
    granularity, so probabilities below ~6e-8 essentially never fire (negligible here).
    TODO(synk): on hardware-only builds switch to pltpu.prng_seed/prng_random_bits
    (off the VALU critical path); the HW PRNG has no CPU/interpret lowering.
    """
    shape = prob.shape
    rows = (jax.lax.broadcasted_iota(jnp.int32, shape, 0) + row_off).astype(jnp.uint32)
    cols = (jax.lax.broadcasted_iota(jnp.int32, shape, 1) + col_off).astype(jnp.uint32)
    h = (rows * jnp.uint32(0x9E3779B1)) ^ (cols * jnp.uint32(0x85EBCA77))
    h = h + seed_i32.astype(jnp.uint32) * jnp.uint32(0xC2B2AE35)
    h = h ^ (h >> 16)
    h = h * jnp.uint32(0x7FEB352D)
    h = h ^ (h >> 15)
    h = h * jnp.uint32(0x846CA68B)
    h = h ^ (h >> 16)
    # Top 24 bits -> exact f32 uniform in [0, 1).
    u = (h >> 8).astype(jnp.int32).astype(jnp.float32) * jnp.float32(1.0 / 16777216.0)
    return u < prob


def _rbm_hidden_resident_kernel(seed_ref, x_ref, w_ref, hb_ref, prob_ref, samp_ref):
    """Grid = (j: hidden tiles, i: batch tiles).  i is innermost, so the (Vp, TN) W
    block index (0, j) is unchanged across the batch sweep and is DMA'd only once per
    hidden tile.  No reduction axis -> no accumulator scratch / pl.when gating."""
    j = pl.program_id(0)
    i = pl.program_id(1)
    logits = jnp.dot(x_ref[...], w_ref[...], preferred_element_type=jnp.float32)
    logits = logits + hb_ref[...]                       # (TM, TN) + (1, TN)
    prob = jax.nn.sigmoid(logits)
    prob_ref[...] = prob.astype(prob_ref.dtype)
    tm, tn = prob.shape
    samp_ref[...] = _bernoulli_sample(prob, seed_ref[0], i * tm, j * tn).astype(samp_ref.dtype)


def _rbm_hidden_tiled_kernel(seed_ref, x_ref, w_ref, hb_ref, prob_ref, samp_ref, acc_ref):
    """Grid = (i: batch tiles, j: hidden tiles, k: visible/reduction tiles)."""
    # program ids hoisted to the top level (interpret-mode safe; do NOT call inside pl.when)
    i = pl.program_id(0)
    j = pl.program_id(1)
    k = pl.program_id(2)
    nk = pl.num_programs(2)

    @pl.when(k == 0)
    def _():
        acc_ref[...] = jnp.zeros_like(acc_ref)

    acc_ref[...] += jnp.dot(x_ref[...], w_ref[...], preferred_element_type=jnp.float32)

    @pl.when(k == nk - 1)
    def _():
        logits = acc_ref[...] + hb_ref[...]
        prob = jax.nn.sigmoid(logits)
        prob_ref[...] = prob.astype(prob_ref.dtype)
        tm, tn = prob.shape
        samp_ref[...] = _bernoulli_sample(prob, seed_ref[0], i * tm, j * tn).astype(samp_ref.dtype)


@functools.partial(
    jax.jit,
    static_argnames=("tm", "tn", "tk", "resident", "vmem_limit", "H", "prob_dtype"))
def _rbm_to_hidden_impl(x, Wp, hbp, seed_arr, *, tm, tn, tk, resident, vmem_limit, H,
                        prob_dtype):
    B, V = x.shape
    Vp, Hp = Wp.shape
    Bp = _round_up(B, tm)

    # Only X is padded/cast per call (W / h_bias were prepared once).
    xb = x.astype(jnp.bfloat16)
    if (Bp, Vp) != (B, V):
        xb = jnp.zeros((Bp, Vp), jnp.bfloat16).at[:B, :V].set(xb)

    cost = pl.CostEstimate(
        flops=2 * Bp * Vp * Hp,
        transcendentals=Bp * Hp,
        bytes_accessed=(xb.size + Wp.size) * 2 + hbp.size * 4
                       + Bp * Hp * jnp.dtype(prob_dtype).itemsize + Bp * Hp,
    )
    out_shape = (jax.ShapeDtypeStruct((Bp, Hp), prob_dtype),   # probabilities
                 jax.ShapeDtypeStruct((Bp, Hp), jnp.int8))     # Bernoulli samples {0,1}

    if resident:
        grid = (Hp // tn, Bp // tm)                            # (j, i); i innermost
        prob, samp = pl.pallas_call(
            _rbm_hidden_resident_kernel,
            out_shape=out_shape,
            grid=grid,
            in_specs=[
                pl.BlockSpec(memory_space=pltpu.MemorySpace.SMEM),     # seed scalar
                pl.BlockSpec((tm, Vp), lambda j, i: (i, 0)),           # X tile (bf16)
                pl.BlockSpec((Vp, tn), lambda j, i: (0, j)),           # W tile (bf16, resident)
                pl.BlockSpec((1, tn), lambda j, i: (0, j)),            # h_bias tile
            ],
            out_specs=(
                pl.BlockSpec((tm, tn), lambda j, i: (i, j)),
                pl.BlockSpec((tm, tn), lambda j, i: (i, j)),
            ),
            compiler_params=pltpu.CompilerParams(
                dimension_semantics=("parallel", "parallel"),
                vmem_limit_bytes=vmem_limit),
            cost_estimate=cost,
        )(seed_arr, xb, Wp, hbp)
    else:
        grid = (Bp // tm, Hp // tn, Vp // tk)
        prob, samp = pl.pallas_call(
            _rbm_hidden_tiled_kernel,
            out_shape=out_shape,
            grid=grid,
            in_specs=[
                pl.BlockSpec(memory_space=pltpu.MemorySpace.SMEM),     # seed scalar
                pl.BlockSpec((tm, tk), lambda i, j, k: (i, k)),        # X tile
                pl.BlockSpec((tk, tn), lambda i, j, k: (k, j)),        # W tile
                pl.BlockSpec((1, tn), lambda i, j, k: (0, j)),         # h_bias tile
            ],
            out_specs=(
                pl.BlockSpec((tm, tn), lambda i, j, k: (i, j)),
                pl.BlockSpec((tm, tn), lambda i, j, k: (i, j)),
            ),
            scratch_shapes=[pltpu.VMEM((tm, tn), jnp.float32)],        # f32 accumulator
            compiler_params=pltpu.CompilerParams(
                dimension_semantics=("parallel", "parallel", "arbitrary"),
                vmem_limit_bytes=vmem_limit),
            cost_estimate=cost,
        )(seed_arr, xb, Wp, hbp)

    return prob[:B, :H], samp[:B, :H]


def rbm_to_hidden_prepared(x, Wp, hbp, *, seed, plan, H, prob_dtype=jnp.float32):
    """Forward with already-padded (bf16) W and (1, Hp) f32 bias."""
    seed_arr = jnp.asarray([seed], jnp.int32)
    vmem_limit = int(min(48 * 1024 * 1024,
                         max(32 * 1024 * 1024, 2 * plan["vmem_bytes"])))
    return _rbm_to_hidden_impl(
        x, Wp, hbp, seed_arr,
        tm=plan["tm"], tn=plan["tn"], tk=plan["tk"], resident=plan["resident"],
        vmem_limit=vmem_limit, H=H, prob_dtype=prob_dtype)


def rbm_forward(x, W, h_bias, seed=0, *, prob_dtype=jnp.float32):
    """Pallas equivalent of RBM.forward / to_hidden: returns (X_prob, sample_X_prob)."""
    B, V = x.shape
    Vw, H = W.shape
    assert V == Vw, "X and W inner dims must match"
    plan = _plan(B, V, H)
    Wp, hbp = prepare_rbm_params(W, h_bias, plan)
    return rbm_to_hidden_prepared(x, Wp, hbp, seed=seed, plan=plan, H=H,
                                  prob_dtype=prob_dtype)


if __name__ == "__main__":
    # Module __init__ shapes: W [visible_unit, hidden_unit], h_bias [hidden_unit]
    visible_unit, hidden_unit, batch = 64, 32, 8

    key = jax.random.PRNGKey(0)
    kx, kw = jax.random.split(key)
    # Deterministic parameter init matching torch.randn(...) * 0.01 (non-xavier branch)
    W = jax.random.normal(kw, (visible_unit, hidden_unit), dtype=jnp.float32) * 0.01
    h_bias = jnp.zeros((hidden_unit,), dtype=jnp.float32)
    x = jax.random.uniform(kx, (batch, visible_unit), dtype=jnp.float32)

    # --- resident-W path (default for these shapes) -------------------------------
    prob, samp = rbm_forward(x, W, h_bias, seed=0)
    jax.block_until_ready((prob, samp))

    ref_prob = jax.nn.sigmoid(x @ W + h_bias)
    assert prob.shape == (batch, hidden_unit) and samp.shape == (batch, hidden_unit)
    # bf16 MXU operands -> looser tolerance than the f32 reference
    assert jnp.allclose(prob, ref_prob, atol=2e-2, rtol=2e-2), "prob mismatch vs reference"
    assert bool(jnp.all((samp == 0) | (samp == 1))), "samples not binary"
    m = float(jnp.mean(samp.astype(jnp.float32)))
    assert 0.2 < m < 0.8, f"sample mean {m} implausible for ~0.5 probabilities"

    # --- tiled-reduction fallback path (forced small TK), prepared-params style ----
    v2 = 256
    kw2, kx2 = jax.random.split(kw)
    W2 = jax.random.normal(kw2, (v2, hidden_unit), dtype=jnp.float32) * 0.01
    x2 = jax.random.uniform(kx2, (batch, v2), dtype=jnp.float32)
    plan2 = dict(tm=32, tn=128, tk=128, Vp=256, resident=False,
                 vmem_bytes=4 * 1024 * 1024)
    Wp2, hbp2 = prepare_rbm_params(W2, h_bias, plan2)     # pad/cast once, reuse per call
    prob2, samp2 = rbm_to_hidden_prepared(x2, Wp2, hbp2, seed=1, plan=plan2,
                                          H=hidden_unit)
    jax.block_until_ready((prob2, samp2))
    ref2 = jax.nn.sigmoid(x2 @ W2 + h_bias)
    assert jnp.allclose(prob2, ref2, atol=2e-2, rtol=2e-2), "tiled-path prob mismatch"
    assert bool(jnp.all((samp2 == 0) | (samp2 == 1))), "tiled-path samples not binary"

    print("KERNEL_OK")
</pallas_src>

<mosaic_0001>
module attributes {stable_mosaic.version = 11 : i64} {
  func.func @_rbm_hidden_resident_kernel(%arg0: i32, %arg1: i32, %arg2: memref<1xi32, #tpu.memory_space<smem>>, %arg3: memref<32x128xbf16, #tpu.memory_space<vmem>>, %arg4: memref<128x128xbf16, #tpu.memory_space<vmem>>, %arg5: memref<1x128xf32, #tpu.memory_space<vmem>>, %arg6: memref<32x128xf32, #tpu.memory_space<vmem>>, %arg7: memref<32x128xi8, #tpu.memory_space<vmem>>) attributes {dimension_semantics = [#tpu.dimension_semantics<parallel>, #tpu.dimension_semantics<parallel>], iteration_bounds = array<i64: 1, 1>, scalar_prefetch = 0 : i64, scratch_operands = 0 : i64, tpu.core_type = #tpu.core_type<tc>, window_params = [{transform_indices = @transform_0, window_bounds = array<i64: 1>}, {transform_indices = @transform_1, window_bounds = array<i64: 32, 128>}, {transform_indices = @transform_2, window_bounds = array<i64: 128, 128>}, {transform_indices = @transform_3, window_bounds = array<i64: 1, 128>}, {transform_indices = @transform_4, window_bounds = array<i64: 32, 128>}, {transform_indices = @transform_5, window_bounds = array<i64: 32, 128>}]} {
    %c0 = arith.constant 0 : index
    %c0_0 = arith.constant 0 : index
    %0 = vector.load %arg3[%c0, %c0_0] : memref<32x128xbf16, #tpu.memory_space<vmem>>, vector<32x128xbf16>
    %c0_1 = arith.constant 0 : index
    %c0_2 = arith.constant 0 : index
    %1 = vector.load %arg4[%c0_1, %c0_2] : memref<128x128xbf16, #tpu.memory_space<vmem>>, vector<128x128xbf16>
    %cst = arith.constant dense<0.000000e+00> : vector<32x128xf32>
    %2 = tpu.matmul %0, %1, %cst {dimension_numbers = #tpu.dot_dimension_numbers<[1], [0], [0], [1], [0, 0, 1, 1], [], []>} : vector<32x128xbf16>, vector<128x128xbf16>, vector<32x128xf32> -> vector<32x128xf32>
    %c0_3 = arith.constant 0 : index
    %c0_4 = arith.constant 0 : index
    %3 = vector.load %arg5[%c0_3, %c0_4] : memref<1x128xf32, #tpu.memory_space<vmem>>, vector<1x128xf32>
    %4 = vector.broadcast %3 : vector<1x128xf32> to vector<32x128xf32>
    %5 = arith.addf %2, %4 : vector<32x128xf32>
    %6 = arith.negf %5 : vector<32x128xf32>
    %7 = math.exp %6 : vector<32x128xf32>
    %cst_5 = arith.constant 1.000000e+00 : f32
    %8 = vector.broadcast %cst_5 : f32 to vector<32x128xf32>
    %9 = arith.addf %8, %7 : vector<32x128xf32>
    %10 = arith.divf %8, %9 : vector<32x128xf32>
    %c0_6 = arith.constant 0 : index
    %c0_7 = arith.constant 0 : index
    %11 = vector.load %arg6[%c0_6, %c0_7] : memref<32x128xf32, #tpu.memory_space<vmem>>, vector<32x128xf32>
    tpu.vector_store %arg6[%c0_6, %c0_7], %10 {strides = array<i32>} : memref<32x128xf32, #tpu.memory_space<vmem>>, vector<32x128xf32>,
    %c0_8 = arith.constant 0 : index
    %12 = memref.load %arg2[%c0_8] : memref<1xi32, #tpu.memory_space<smem>>
    %c32_i32 = arith.constant 32 : i32
    %13 = arith.muli %arg1, %c32_i32 : i32
    %c128_i32 = arith.constant 128 : i32
    %14 = arith.muli %arg0, %c128_i32 : i32
    %15 = tpu.iota {dimensions = array<i32: 0>} : vector<32x128xi32>
    %16 = vector.broadcast %13 : i32 to vector<32x128xi32>
    %17 = arith.addi %15, %16 : vector<32x128xi32>
    %18 = tpu.iota {dimensions = array<i32: 1>} : vector<32x128xi32>
    %19 = vector.broadcast %14 : i32 to vector<32x128xi32>
    %20 = arith.addi %18, %19 : vector<32x128xi32>
    %c-1640531535_i32 = arith.constant -1640531535 : i32
    %21 = vector.broadcast %c-1640531535_i32 : i32 to vector<32x128xi32>
    %22 = arith.muli %17, %21 : vector<32x128xi32>
    %c-2048144777_i32 = arith.constant -2048144777 : i32
    %23 = vector.broadcast %c-2048144777_i32 : i32 to vector<32x128xi32>
    %24 = arith.muli %20, %23 : vector<32x128xi32>
    %25 = arith.xori %22, %24 : vector<32x128xi32>
    %c-1028477387_i32 = arith.constant -1028477387 : i32
    %26 = arith.muli %12, %c-1028477387_i32 : i32
    %27 = vector.broadcast %26 : i32 to vector<32x128xi32>
    %28 = arith.addi %25, %27 : vector<32x128xi32>
    %c16_i32 = arith.constant 16 : i32
    %29 = vector.broadcast %c16_i32 : i32 to vector<32x128xi32>
    %30 = arith.shrui %28, %29 : vector<32x128xi32>
    %31 = arith.xori %28, %30 : vector<32x128xi32>
    %c2146121005_i32 = arith.constant 2146121005 : i32
    %32 = vector.broadcast %c2146121005_i32 : i32 to vector<32x128xi32>
    %33 = arith.muli %31, %32 : vector<32x128xi32>
    %c15_i32 = arith.constant 15 : i32
    %34 = vector.broadcast %c15_i32 : i32 to vector<32x128xi32>
    %35 = arith.shrui %33, %34 : vector<32x128xi32>
    %36 = arith.xori %33, %35 : vector<32x128xi32>
    %c-2073254261_i32 = arith.constant -2073254261 : i32
    %37 = vector.broadcast %c-2073254261_i32 : i32 to vector<32x128xi32>
    %38 = arith.muli %36, %37 : vector<32x128xi32>
    %c16_i32_9 = arith.constant 16 : i32
    %39 = vector.broadcast %c16_i32_9 : i32 to vector<32x128xi32>
    %40 = arith.shrui %38, %39 : vector<32x128xi32>
    %41 = arith.xori %38, %40 : vector<32x128xi32>
    %c8_i32 = arith.constant 8 : i32
    %42 = vector.broadcast %c8_i32 : i32 to vector<32x128xi32>
    %43 = arith.shrui %41, %42 : vector<32x128xi32>
    %44 = arith.sitofp %43 : vector<32x128xi32> to vector<32x128xf32>
    %cst_10 = arith.constant 5.96046448E-8 : f32
    %45 = vector.broadcast %cst_10 : f32 to vector<32x128xf32>
    %46 = arith.mulf %44, %45 : vector<32x128xf32>
    %47 = arith.cmpf olt, %46, %10 : vector<32x128xf32>
    %48 = arith.extui %47 : vector<32x128xi1> to vector<32x128xi8>
    %c0_11 = arith.constant 0 : index
    %c0_12 = arith.constant 0 : index
    %49 = vector.load %arg7[%c0_11, %c0_12] : memref<32x128xi8, #tpu.memory_space<vmem>>, vector<32x128xi8>
    tpu.vector_store %arg7[%c0_11, %c0_12], %48 {strides = array<i32>} : memref<32x128xi8, #tpu.memory_space<vmem>>, vector<32x128xi8>,
    return
  }
  func.func @transform_0(%arg0: i32, %arg1: i32) -> i32 {
    %c0_i32 = arith.constant 0 : i32
    %c0_i32_0 = arith.constant 0 : i32
    return %c0_i32 : i32
  }
  func.func @transform_1(%arg0: i32, %arg1: i32) -> (i32, i32) {
    %c0_i32 = arith.constant 0 : i32
    %c0_i32_0 = arith.constant 0 : i32
    return %arg1, %c0_i32 : i32, i32
  }
  func.func @transform_2(%arg0: i32, %arg1: i32) -> (i32, i32) {
    %c0_i32 = arith.constant 0 : i32
    %c0_i32_0 = arith.constant 0 : i32
    return %c0_i32, %arg0 : i32, i32
  }
  func.func @transform_3(%arg0: i32, %arg1: i32) -> (i32, i32) {
    %c0_i32 = arith.constant 0 : i32
    %c0_i32_0 = arith.constant 0 : i32
    return %c0_i32, %arg0 : i32, i32
  }
  func.func @transform_4(%arg0: i32, %arg1: i32) -> (i32, i32) {
    %c0_i32 = arith.constant 0 : i32
    return %arg1, %arg0 : i32, i32
  }
  func.func @transform_5(%arg0: i32, %arg1: i32) -> (i32, i32) {
    %c0_i32 = arith.constant 0 : i32
    return %arg1, %arg0 : i32, i32
  }
}

</mosaic_0001>

<bundles_post_ra>
// kernel: _rbm_to_hidden_impl.1
= control target key start
LH: loop header
LB: loop body
LE: loop exit
PB: predicated region body
PF: predicated region fallthrough
CT: control target
= control target key end

     0   :  { %12 = vsyncpa [#allocation4], 0  ;;  %s442_s21 = smov [#allocation3]   ;;  %s443_s23 = smov 64   ;;  %s530_s0 = inlined_call_operand.<no memory space> [shape: s32[1], index: 0, kind: input, shape index: {}]   ;;  %s531_s1 = inlined_call_operand.vmem [shape: bf16[32,128], index: 1, kind: input, shape index: {}]   ;;  %s532_s2 = inlined_call_operand.hbm [shape: bf16[128,128], index: 2, kind: input, shape index: {}]   ;;  %s533_s3 = inlined_call_operand.vmem [shape: f32[1,128], index: 3, kind: input, shape index: {}]   ;;  %s534_s4 = inlined_call_operand.vmem [shape: f32[32,128], index: 4, kind: output, shape index: {0}]   ;;  %s535_s5 = inlined_call_operand.vmem [shape: s8[32,128], index: 5, kind: output, shape index: {1}]  }
   0x1   :  { %s21_s20 = sshll.u32 %s532_s2, 4  ;;  %s23_s22 = sshll.u32 %s442_s21, 4  ;;  %s22_s20 = int_to_ptr.hbm [resolvable:$true] %s21_s20  ;;  %s24_s22 = int_to_ptr.vmem [resolvable:$true] %s23_s22 }
   0x2   :  { %s444_s24 = smov 4  }
   0x3   :  { %29 = dma.hbm_to_vmem [thread:$0]  %s22_s20, 1024, %s24_s22, [#allocation4], %s443_s23, %s443_s23, %s444_s24  }
   0x4   :  { %440 = dma.done.wait [#allocation4], 1024  }
   0x5   :  { %441 = vsyncadd [#allocation4], 4294966272  ;;  %v386_v0 = vld [vmem:[#allocation3 + $0x38] sm:$0xff]  ;;  %v385_v1 = vld [vmem:[#allocation3 + $0x30] sm:$0xff]  ;;  %v224_v10 = vlaneseq  ;;  %s247_s30 = smul.u32 3266489909, %s530_s0 }
   0x6   :  { %122 = vmatpush.bf16.msra.mxu0 %v386_v0  ;;  %387 = vmatpush.bf16.msra.mxu1 %v386_v0  ;;  %v384_v2 = vld [vmem:[#allocation3 + $0x28] sm:$0xff]  ;;  %v383_v3 = vld [vmem:[#allocation3 + $0x20] sm:$0xff]  ;;  %v382_v4 = vld [vmem:[#allocation3 + $0x18] sm:$0xff] }
   0x7   :  { %v381_v5 = vld [vmem:[#allocation3 + $0x10] sm:$0xff]  ;;  %v380_v6 = vld [vmem:[#allocation3 + $0x8] sm:$0xff]  ;;  %v379_v7 = vld [vmem:[#allocation3] sm:$0xff]  ;;  %v225_v11 = vshrl.u32 %v224_v10, 7  ;;  %v235_v12 = vand.u32 127, %v224_v10  ;;  %v248_v21 = vstv %s247_s30 }
   0x8   :  { %v377_v8 = vld [vmem:[%s531_s1] sm:$0xff]  ;;  %v378_v9 = vld [vmem:[%s531_s1 + $0x8] sm:$0xff] }
   0x9   :  { %v227_v13 = vadd.s32 16, %v225_v11  ;;  %v226_v14 = vadd.s32 8, %v225_v11  ;;  %v238_v15 = vmul.u32 2654435761, %v225_v11  ;;  %v242_v16 = vmul.u32 2246822519, %v235_v12 }
   0xa   :  { %123 = vmatpush.bf16.msra.mxu0 %v385_v1  ;;  %388 = vmatpush.bf16.msra.mxu1 %v385_v1  ;;  %v228_v18 = vadd.s32 24, %v225_v11  ;;  %v399_v34 = vld [vmem:[%s533_s3] ss:$0 sm:$0xff] }
   0xb   :  { %v240_v17 = vmul.u32 2654435761, %v227_v13  ;;  %v239_v19 = vmul.u32 2654435761, %v226_v14  ;;  %v243_v20 = vxor.u32 %v242_v16, %v238_v15 }
   0xc   :  { %v241_v23 = vmul.u32 2654435761, %v228_v18 }
   0xd   :  { %v245_v22 = vxor.u32 %v242_v16, %v240_v17  ;;  %v244_v24 = vxor.u32 %v242_v16, %v239_v19  ;;  %v249_v25 = vadd.s32 %v248_v21, %v243_v20 }
   0xe   :  { %124 = vmatpush.bf16.msra.mxu0 %v384_v2  ;;  %389 = vmatpush.bf16.msra.mxu1 %v384_v2  ;;  %v246_v27 = vxor.u32 %v242_v16, %v241_v23 }
   0xf   :  { %v251_v26 = vadd.s32 %v248_v21, %v245_v22  ;;  %v250_v28 = vadd.s32 %v248_v21, %v244_v24  ;;  %v253_v29 = vshrl.u32 %v249_v25, 16 }
  0x10   :  { %v252_v31 = vadd.s32 %v248_v21, %v246_v27 }
  0x11   :  { %v255_v30 = vshrl.u32 %v251_v26, 16  ;;  %v254_v32 = vshrl.u32 %v250_v28, 16  ;;  %v257_v33 = vxor.u32 %v253_v29, %v249_v25 }
  0x12   :  { %125 = vmatpush.bf16.msra.mxu0 %v383_v3  ;;  %390 = vmatpush.bf16.msra.mxu1 %v383_v3  ;;  %v256_v36 = vshrl.u32 %v252_v31, 16 }
  0x13   :  { %v259_v35 = vxor.u32 %v255_v30, %v251_v26  ;;  %v258_v37 = vxor.u32 %v254_v32, %v250_v28  ;;  %v261_v39 = vmul.u32 2146121005, %v257_v33 }
  0x14   :  { %v260_v44 = vxor.u32 %v256_v36, %v252_v31 }
  0x15   :  { %v263_v43 = vmul.u32 2146121005, %v259_v35  ;;  %v262_v47 = vmul.u32 2146121005, %v258_v37  ;;  %v265_v48 = vshrl.u32 %v261_v39, 15 }
  0x16   :  { %126 = vmatpush.bf16.msra.mxu0 %v382_v4  ;;  %391 = vmatpush.bf16.msra.mxu1 %v382_v4  ;;  %v264_v49 = vmul.u32 2146121005, %v260_v44 }
  0x17   :  { %v267_v50 = vshrl.u32 %v263_v43, 15  ;;  %v266_v51 = vshrl.u32 %v262_v47, 15  ;;  %v269_v52 = vxor.u32 %v265_v48, %v261_v39 }
  0x18   :  { %v268_v57 = vshrl.u32 %v264_v49, 15 }
  0x19   :  { %v271_v59 = vxor.u32 %v267_v50, %v263_v43  ;;  %v270_v61 = vxor.u32 %v266_v51, %v262_v47  ;;  %v273_v0 = vmul.u32 2221713035, %v269_v52 }
  0x1a   :  { %127 = vmatpush.bf16.msra.mxu0 %v381_v5  ;;  %392 = vmatpush.bf16.msra.mxu1 %v381_v5  ;;  %v272_v3 = vxor.u32 %v268_v57, %v264_v49 }
  0x1b   :  { %v275_v4 = vmul.u32 2221713035, %v271_v59  ;;  %v274_v5 = vmul.u32 2221713035, %v270_v61 }
  0x1d   :  { %v278_v10 = vshrl.u32 %v274_v5, 16 }
  0x1e   :  { %128 = vmatpush.bf16.msra.mxu0 %v380_v6  ;;  %393 = vmatpush.bf16.msra.mxu1 %v380_v6  ;;  %v277_v6 = vshrl.u32 %v273_v0, 16 }
  0x1f   :  { %v282_v21 = vxor.u32 %v278_v10, %v274_v5 }
  0x20   :  { %v281_v12 = vxor.u32 %v277_v6, %v273_v0 }
  0x22   :  { %129 = vmatpush.bf16.msra.mxu0 %v379_v7  ;;  %394 = vmatpush.bf16.msra.mxu1 %v379_v7  ;;  %v276_v7 = vmul.u32 2221713035, %v272_v3  ;;  %v285_v25 = vshrl.u32 %v281_v12, 8 }
  0x24   :  { %v280_v18 = vshrl.u32 %v276_v7, 16  ;;  %v289_v37 = vcvt.s32.f32 %v285_v25 }
  0x25   :  { %130 = vmatmul.bf16.vlgmr.msra.gmra.mxu0 %v377_v8  ;;  %135 = vmatmul.bf16.vlgmr.msra.gmra.mxu1 %v378_v9  ;;  %v279_v9 = vshrl.u32 %v275_v4, 16 }
  0x26   :  { %v284_v31 = vxor.u32 %v280_v18, %v276_v7  ;;  %v445_v7 = vmov 0  }
  0x27   :  { %v283_v20 = vxor.u32 %v279_v9, %v275_v4 }
  0x28   :  { %v288_v44 = vshrl.u32 %v284_v31, 8 }
  0x29   :  { %v287_v33 = vshrl.u32 %v283_v20, 8 }
  0x2b   :  { %v291_v51 = vcvt.s32.f32 %v287_v33 }
  0xa2   :  { %v131_v38 = vpop.f32.mrf.mxu0  ;;  %v136_v40 = vpop.f32.mrf.mxu1 }
  0xa3   :  { %v132_v41 = vadd.f32 %v399_v34, %v131_v38  ;;  %v137_v42 = vadd.f32 %v399_v34, %v136_v40 }
  0xa5   :  { %v373_v45 = vmul.f32 -1.442695, %v132_v41  ;;  %v375_v46 = vmul.f32 -1.442695, %v137_v42 }
  0xa7   :  { %400 = vpow2.f32 %v373_v45 }
  0xa8   :  { %402 = vpow2.f32 %v375_v46 }
  0xaa   :  { %v133_v53 = vpop.f32.mrf.mxu0  ;;  %v138_v54 = vpop.f32.mrf.mxu1 }
  0xab   :  { %v134_v55 = vadd.f32 %v399_v34, %v133_v53  ;;  %v139_v56 = vadd.f32 %v399_v34, %v138_v54  ;;  %v286_v34 = vshrl.u32 %v282_v21, 8  ;;  %v293_v54 = vmul.f32 5.9604645e-08, %v289_v37 }
  0xad   :  { %v401_v58 = vpop.eup %400  ;;  %v374_v60 = vmul.f32 -1.442695, %v134_v55  ;;  %v376_v1 = vmul.f32 -1.442695, %v139_v56  ;;  %v290_v48 = vcvt.s32.f32 %v286_v34  ;;  %v292_v56 = vcvt.s32.f32 %v288_v44 }
  0xae   :  { %v403_v62 = vpop.eup %402  ;;  %v153_v63 = vadd.f32 1.0, %v401_v58 }
  0xaf   :  { %v155_v2 = vadd.f32 1.0, %v403_v62  ;;  %404 = vpow2.f32 %v374_v60  ;;  %v294_v58 = vmul.f32 5.9604645e-08, %v290_v48  ;;  %v296_v3 = vmul.f32 5.9604645e-08, %v292_v56 }
  0xb0   :  { %406 = vrcp.f32 %v153_v63  ;;  %v166_v23 = vand.u32 2147483647, %v153_v63  ;;  %v168_v24 = vand.u32 2147483648, %v153_v63  ;;  %vm162_vm2 = vweird.f32 %v153_v63 }
  0xb1   :  { %408 = vrcp.f32 %v155_v2  ;;  %v198_v28 = vand.u32 2147483648, %v155_v2  ;;  %v196_v30 = vand.u32 2147483647, %v155_v2  ;;  %vm192_vm4 = vweird.f32 %v155_v2 }
  0xb2   :  { %410 = vpow2.f32 %v376_v1  ;;  %v169_v36 = vor.u32 1.1754944e-38, %v168_v24  ;;  %vm167_vm5 = vcmp.eq.f32.partialorder %v166_v23, 8.507059e+37 }
  0xb3   :  { %v199_v40 = vor.u32 1.1754944e-38, %v198_v28  ;;  %vm197_vm7 = vcmp.eq.f32.partialorder %v196_v30, 8.507059e+37 }
  0xb5   :  { %v405_v8 = vpop.eup %404 }
  0xb6   :  { %v407_v11 = vpop.eup %406  ;;  %v491_v13 = vadd.f32 1.0, %v405_v8 }
  0xb7   :  { %v409_v14 = vpop.eup %408  ;;  %v158_v15 = vmul.f32 %v407_v11, %v153_v63  ;;  %vm163_vm0 = vweird.f32 %v407_v11  ;;  %v295_v63 = vmul.f32 5.9604645e-08, %v291_v51 }
  0xb8   :  { %v411_v16 = vpop.eup %410  ;;  %v188_v17 = vmul.f32 %v409_v14, %v155_v2  ;;  %412 = vrcp.f32 %v491_v13  ;;  %vm193_vm1 = vweird.f32 %v409_v14  ;;  %vm164_vm3 = vmor %vm162_vm2, %vm163_vm0  ;;  %v183_v49 = vand.u32 2147483648, %v491_v13 }
  0xb9   :  { %v159_v19 = vsub.f32 1.0, %v158_v15  ;;  %v494_v22 = vadd.f32 1.0, %v411_v16  ;;  %vm194_vm6 = vmor %vm192_vm4, %vm193_vm1  ;;  %v181_v53 = vand.u32 2147483647, %v491_v13  ;;  %vm177_vm9 = vweird.f32 %v491_v13 }
  0xba   :  { %v189_v26 = vsub.f32 1.0, %v188_v17  ;;  %v184_v60 = vor.u32 1.1754944e-38, %v183_v49 }
  0xbb   :  { %v160_v27 = vmul.f32 %v407_v11, %v159_v19  ;;  %414 = vrcp.f32 %v494_v22  ;;  %v213_v59 = vand.u32 2147483648, %v494_v22  ;;  %v211_v62 = vand.u32 2147483647, %v494_v22 }
  0xbc   :  { %v190_v29 = vmul.f32 %v409_v14, %v189_v26  ;;  %vm182_vm12 = vcmp.eq.f32.partialorder %v181_v53, 8.507059e+37  ;;  %vm207_vm13 = vweird.f32 %v494_v22 }
  0xbd   :  { %v161_v32 = vadd.f32 %v407_v11, %v160_v27  ;;  %v214_v4 = vor.u32 1.1754944e-38, %v213_v59  ;;  %vm212_vm2 = vcmp.eq.f32.partialorder %v211_v62, 8.507059e+37 }
  0xbe   :  { %v413_v35 = vpop.eup %412  ;;  %v191_v38 = vadd.f32 %v409_v14, %v190_v29 }
  0xbf   :  { %v165_v39 = vsel %vm164_vm3, %v407_v11, %v161_v32  ;;  %v173_v41 = vmul.f32 %v413_v35, %v491_v13  ;;  %vm178_vm8 = vweird.f32 %v413_v35 }
  0xc0   :  { %v170_v42 = vsel %vm167_vm5, %v169_v36, %v165_v39  ;;  %v195_v43 = vsel %vm194_vm6, %v409_v14, %v191_v38  ;;  %vm179_vm10 = vmor %vm177_vm9, %vm178_vm8 }
  0xc1   :  { %v415_v45 = vpop.eup %414  ;;  %217 = vst [vmem:[%s534_s4] sm:$0xff] %v170_v42  ;;  %v200_v46 = vsel %vm197_vm7, %v199_v40, %v195_v43  ;;  %v174_v47 = vsub.f32 1.0, %v173_v41  ;;  %vm297_vm14 = vcmp.lt.f32.partialorder %v293_v54, %v170_v42 }
  0xc2   :  { %219 = vst [vmem:[%s534_s4 + $0x10] sm:$0xff] %v200_v46  ;;  %v203_v50 = vmul.f32 %v415_v45, %v494_v22  ;;  %vm208_vm11 = vweird.f32 %v415_v45  ;;  %vm299_vm3 = vcmp.lt.f32.partialorder %v295_v63, %v200_v46 }
  0xc3   :  { %v175_v52 = vmul.f32 %v413_v35, %v174_v47  ;;  %vm209_vm0 = vmor %vm207_vm13, %vm208_vm11 }
  0xc4   :  { %v204_v55 = vsub.f32 1.0, %v203_v50 }
  0xc5   :  { %v176_v57 = vadd.f32 %v413_v35, %v175_v52 }
  0xc6   :  { %v205_v61 = vmul.f32 %v415_v45, %v204_v55 }
  0xc7   :  { %v180_v0 = vsel %vm179_vm10, %v413_v35, %v176_v57 }
  0xc8   :  { %v185_v1 = vsel %vm182_vm12, %v184_v60, %v180_v0  ;;  %v206_v2 = vadd.f32 %v415_v45, %v205_v61 }
  0xc9   :  { %218 = vst [vmem:[%s534_s4 + $0x8] sm:$0xff] %v185_v1  ;;  %vm298_vm15 = vcmp.lt.f32.partialorder %v294_v58, %v185_v1 }
  0xca   :  { %vm301_vm1 = vmpackc.low %vm298_vm15, %vm297_vm14  ;;  %v210_v5 = vsel %vm209_vm0, %v415_v45, %v206_v2 }
  0xcb   :  { %v215_v6 = vsel %vm212_vm2, %v214_v4, %v210_v5  ;;  %v303_v8 = vsel %vm301_vm1, 16711935, %v445_v7 }
  0xcc   :  { %220 = vst [vmem:[%s534_s4 + $0x18] sm:$0xff] %v215_v6  ;;  %vm300_vm4 = vcmp.lt.f32.partialorder %v296_v3, %v215_v6 }
  0xcd   :  { %vm302_vm5 = vmpackc.low %vm300_vm4, %vm299_vm3 }
  0xce   :  { %v304_v9 = vsel %vm302_vm5, 16711935, %v445_v7 }
  0xcf   :  { %v305_v10 = vpack.c.b8 %v304_v9, %v303_v8 }
  0xd1   :  { %vm306_vm6 = vnez %v305_v10 }
  0xd2   :  { %v307_v11 = vsel %vm306_vm6, 16843009, %v445_v7 }
  0xd3   :  { %v308_v12 = vunpack.c.0.s8 %v307_v11  ;;  %v309_v13 = vunpack.c.1.s8 %v307_v11  ;;  %v310_v14 = vunpack.c.2.s8 %v307_v11  ;;  %v311_v15 = vunpack.c.3.s8 %v307_v11 }
  0xd5   :  { %v312_v16 = vpack.c.b16 %v308_v12, %v308_v12  ;;  %v314_v17 = vpack.c.b16 %v309_v13, %v309_v13  ;;  %v316_v18 = vpack.c.b16 %v310_v14, %v310_v14  ;;  %v318_v19 = vpack.c.b16 %v311_v15, %v311_v15 }
  0xd7   :  { %v313_v20 = vpack.c.b8 %v312_v16, %v312_v16  ;;  %v315_v21 = vpack.c.b8 %v314_v17, %v314_v17  ;;  %v317_v22 = vpack.c.b8 %v316_v18, %v316_v18  ;;  %v319_v23 = vpack.c.b8 %v318_v19, %v318_v19 }
  0xd9   :  { %320 = vst [vmem:[%s535_s5] sm:$0x3] %v313_v20 }
  0xda   :  { %321 = vst [vmem:[%s535_s5 + $0x2] sm:$0x3] %v315_v21 }
  0xdb   :  { %322 = vst [vmem:[%s535_s5 + $0x4] sm:$0x3] %v317_v22 }
  0xdc   :  { %323 = vst [vmem:[%s535_s5 + $0x6] sm:$0x3] %v319_v23 }
  0xdd   :  { %332 = vsyncpa [#allocation4], 1 }

</bundles_post_ra>
